<compile_context>
chip_gen: v7x
topology: tpu7x:2x2x1
jax: 0.10.0
libtpu: 0.0.40
codegen_flags: <defaults>
</compile_context>

<pallas_src>
import functools
import numpy as np
import jax
import jax.numpy as jnp
from jax import lax
from jax.experimental import pallas as pl
from jax.experimental.pallas import tpu as pltpu


def _round_up(x, m):
    return ((int(x) + m - 1) // m) * m


def _nbytes(shape, dtype):
    return int(np.prod(shape)) * jnp.dtype(dtype).itemsize


def _vmem_capacity_bytes():
    try:
        return int(pltpu.get_tpu_info().vmem_capacity_bytes)
    except Exception:
        return 64 * 1024 * 1024          # conservative default (v7x per-TC size)


def _vmem_limit(footprint_bytes):
    cap = int(0.85 * _vmem_capacity_bytes())           # headroom for Mosaic scratch
    want = max(32 * 1024 * 1024, 3 * int(footprint_bytes))
    return int(max(16 * 1024 * 1024, min(cap, want)))


# ---------------------------------------------------------------------------
# Kernel 1: LayerNorm (rows t>=1) + hoisted layer-0 input GEMM, tiled over time.
# ---------------------------------------------------------------------------
def _input_gates_kernel(embed_true, chunk_len, mm_dtype,
                        seq_ref, gamma_ref, beta_ref, w_ref, b_ref, g_ref):
    x = seq_ref[...].astype(jnp.float32)                         # (CH, Bp, Ep)
    lane = lax.broadcasted_iota(jnp.int32, x.shape, 2)
    emask = lane < embed_true
    inv_e = 1.0 / float(embed_true)
    mean = jnp.sum(x, axis=-1, keepdims=True) * inv_e            # padded lanes are 0
    d = jnp.where(emask, x - mean, 0.0)
    var = jnp.sum(d * d, axis=-1, keepdims=True) * inv_e         # two-pass variance
    normed = d * lax.rsqrt(var + 1e-6) * gamma_ref[...] + beta_ref[...]
    # Global row t == 0 is the image feature vector (no LayerNorm applied).
    # Dropout(p=0.1) is the identity in eval/inference mode.
    t_idx = (lax.broadcasted_iota(jnp.int32, (x.shape[0], 1, 1), 0)
             + pl.program_id(0) * chunk_len)
    xin = jnp.where(t_idx == 0, x, normed)
    ch, bp, ep = x.shape
    g = jnp.dot(xin.reshape(ch * bp, ep).astype(mm_dtype), w_ref[...],
                preferred_element_type=jnp.float32) + b_ref[...]
    g_ref[...] = g.reshape(g_ref.shape)


# ---------------------------------------------------------------------------
# Kernel 2: serial LSTM recurrence; layer-0 gates streamed from HBM through a
# manual double buffer; optional batch-split grid axis (both v7x TensorCores).
# ---------------------------------------------------------------------------
def _recurrent_kernel(num_layers, hidden_pad, chunk_len, n_chunks, batch_block,
                      mm_dtype, *refs):
    L, Hp, CH, Bb = num_layers, hidden_pad, chunk_len, batch_block
    it = iter(refs)
    len_ref = next(it)                     # (Bb, 1)        int32
    h0_ref = next(it)                      # (L, Bb, Hp)    f32
    c0_ref = next(it)                      # (L, Bb, Hp)    f32
    w_hh0_ref = next(it)                   # (Hp, 4Hp)      mm_dtype
    deep = [(next(it), next(it), next(it)) for _ in range(L - 1)]
    g0_hbm = next(it)                      # (Tc, Bp, 4Hp)  f32 (HBM / ANY)
    hid_ref = next(it)                     # (Tc, Bb, Hp)   mm_dtype  out
    hn_ref = next(it)                      # (L, Bb, Hp)    f32 out
    cn_ref = next(it)                      # (L, Bb, Hp)    f32 out
    g0_buf = next(it)                      # (2*CH, Bb, 4Hp) f32 scratch
    sem = next(it)                         # DMA semaphores, (2,)

    full_batch = (g0_hbm.shape[1] == Bb)
    b_off = pl.multiple_of(pl.program_id(0) * Bb, Bb)

    def g0_src(chunk):
        if full_batch:
            return g0_hbm.at[pl.ds(chunk * CH, CH)]
        return g0_hbm.at[pl.ds(chunk * CH, CH), pl.ds(b_off, Bb), :]

    def start_fetch(chunk, slot_off, slot):
        pltpu.make_async_copy(g0_src(chunk), g0_buf.at[pl.ds(slot_off, CH)],
                              sem.at[slot]).start()

    # prime the double buffer with chunk 0 into slot 0
    start_fetch(0, 0, 0)

    lengths = len_ref[...]                                       # (Bb, 1)
    w_hh0 = w_hh0_ref[...]
    w_ih_d = [w[...] for (w, _, _) in deep]
    w_hh_d = [w[...] for (_, w, _) in deep]
    b_d = [b[...] for (_, _, b) in deep]

    def gate_update(gates, h_prev, c_prev, valid):
        # sigmoid(x) == 0.5*(tanh(0.5*x)+1): a single EUP transcendental per gate.
        i_g = 0.5 * (jnp.tanh(0.5 * gates[:, 0 * Hp:1 * Hp]) + 1.0)
        f_g = 0.5 * (jnp.tanh(0.5 * gates[:, 1 * Hp:2 * Hp]) + 1.0)
        g_g = jnp.tanh(gates[:, 2 * Hp:3 * Hp])
        o_g = 0.5 * (jnp.tanh(0.5 * gates[:, 3 * Hp:4 * Hp]) + 1.0)
        c_new = f_g * c_prev + i_g * g_g
        h_new = o_g * jnp.tanh(c_new)
        # pack_padded_sequence semantics: freeze state once t >= length.
        return jnp.where(valid, h_new, h_prev), jnp.where(valid, c_new, c_prev)

    def chunk_body(c, carry):
        slot = c % 2
        off = pl.multiple_of(slot * CH, CH)
        # wait for the chunk resident in `slot` (src only fixes the byte count)
        pltpu.make_async_copy(g0_src(0), g0_buf.at[pl.ds(off, CH)],
                              sem.at[slot]).wait()

        @pl.when(c + 1 < n_chunks)
        def _():
            nslot = 1 - slot
            start_fetch(c + 1, pl.multiple_of(nslot * CH, CH), nslot)

        def step(s, hc):
            hs, cs = hc[:L], hc[L:]
            t = c * CH + s
            valid = t < lengths                                   # (Bb, 1)
            # layer 0: input projection + bias precomputed (kernel 1), streamed in.
            gates = g0_buf[off + s] + jnp.dot(hs[0].astype(mm_dtype), w_hh0,
                                              preferred_element_type=jnp.float32)
            h_new, c_new = gate_update(gates, hs[0], cs[0], valid)
            new_h, new_c = [h_new], [c_new]
            inp = h_new
            for l in range(1, L):
                # two accumulating dots: no per-step concat copy on vld/vst slots.
                gates = (jnp.dot(inp.astype(mm_dtype), w_ih_d[l - 1],
                                 preferred_element_type=jnp.float32)
                         + jnp.dot(hs[l].astype(mm_dtype), w_hh_d[l - 1],
                                   preferred_element_type=jnp.float32)
                         + b_d[l - 1])
                h_new, c_new = gate_update(gates, hs[l], cs[l], valid)
                new_h.append(h_new)
                new_c.append(c_new)
                inp = h_new
            hid_ref[t] = inp.astype(hid_ref.dtype)                # lane-dense store
            return tuple(new_h) + tuple(new_c)

        return lax.fori_loop(0, CH, step, carry, unroll=2)

    init = tuple(h0_ref[l] for l in range(L)) + tuple(c0_ref[l] for l in range(L))
    final = lax.fori_loop(0, n_chunks, chunk_body, init)
    for l in range(L):
        hn_ref[l] = final[l]
        cn_ref[l] = final[L + l]


# ---------------------------------------------------------------------------
# Kernel 3: vocab projection of the packed (valid) hidden rows, tiled (rows, V);
# both grid axes parallel -> usable by both v7x TensorCores.
# ---------------------------------------------------------------------------
def _proj_kernel(x_ref, w_ref, b_ref, o_ref):
    o_ref[...] = (jnp.dot(x_ref[...], w_ref[...], preferred_element_type=jnp.float32)
                  + b_ref[...])


def decoder_rnn_forward(params, features, captions, lengths_np, prev_state,
                        mm_dtype=jnp.bfloat16):
    """JAX/Pallas equivalent of DecoderRNN.forward (eval mode).

    Returns (outputs, (h_n, c_n)): outputs is (sum(lengths), vocab) in PyTorch
    packed order; h_n/c_n are (num_layers, B, hidden) in original batch order.
    mm_dtype controls matmul-operand / hidden-output dtype; accumulation, gate
    math and recurrent state are always f32.
    """
    emb_table = params["embed"]                   # (V, E)
    B, T = captions.shape
    E = emb_table.shape[1]
    H = params["lstm"][0][1].shape[1]
    V = params["lin_w"].shape[0]
    L = len(params["lstm"])
    Tt = T + 1

    lengths_np = np.asarray(lengths_np, np.int32)
    assert (lengths_np >= 1).all() and (lengths_np <= Tt).all(), \
        "pack_padded_sequence requires 1 <= length <= T+1"

    # Lane/sublane-aligned padded dims (dense vregs, unmasked stores).
    Ep = _round_up(E, 128)
    Hp = _round_up(H, 128)
    Vp = _round_up(V, 128)
    Bp = _round_up(B, 8)

    # Batch split across TensorCores (v7x) when it stays sublane-aligned.
    n_split = 2 if (Bp >= 16 and Bp % 16 == 0) else 1
    Bb = Bp // n_split

    # Time chunking: layer-0 gates streamed from HBM in CH-step chunks (double buffer).
    per_step = Bb * 4 * Hp * 4                         # f32 gate bytes / step / core
    CH = int(max(1, min(Tt, 8, (2 * 1024 * 1024) // max(per_step, 1))))
    n_chunks = -(-Tt // CH)
    Tc = n_chunks * CH

    # --- glue: embedding gather + concat + layout transposes + zero padding -----
    cap_emb = jnp.take(emb_table, captions, axis=0)                # (B, T, E)
    seq = jnp.concatenate([features[:, None, :], cap_emb], axis=1)  # (B, Tt, E)
    seq_tm = jnp.transpose(seq, (1, 0, 2))                         # (Tt, B, E)
    seq_tm = jnp.pad(seq_tm, ((0, Tc - Tt), (0, Bp - B), (0, Ep - E))).astype(mm_dtype)

    gamma = jnp.pad(params["ln_gamma"], (0, Ep - E)).reshape(1, Ep)
    beta = jnp.pad(params["ln_beta"], (0, Ep - E)).reshape(1, Ep)
    lengths2d = jnp.pad(jnp.asarray(lengths_np, jnp.int32), (0, Bp - B)).reshape(Bp, 1)
    h0 = jnp.pad(prev_state[0], ((0, 0), (0, Bp - B), (0, Hp - H)))
    c0 = jnp.pad(prev_state[1], ((0, 0), (0, Bp - B), (0, Hp - H)))

    def pad_gate_rows(w):            # (4H, in) -> (4Hp, in): per-gate H padding
        w4 = w.reshape(4, H, w.shape[-1])
        return jnp.pad(w4, ((0, 0), (0, Hp - H), (0, 0))).reshape(4 * Hp, w.shape[-1])

    def pad_gate_vec(b):             # (4H,) -> (1, 4Hp)
        return jnp.pad(b.reshape(4, H), ((0, 0), (0, Hp - H))).reshape(1, 4 * Hp)

    w_ih0, w_hh0, b_ih0, b_hh0 = params["lstm"][0]
    w_ih0_t = jnp.pad(pad_gate_rows(w_ih0), ((0, 0), (0, Ep - E))).T.astype(mm_dtype)
    w_hh0_t = jnp.pad(pad_gate_rows(w_hh0), ((0, 0), (0, Hp - H))).T.astype(mm_dtype)
    b0 = pad_gate_vec(b_ih0 + b_hh0)

    # --- kernel 1: LayerNorm + layer-0 input GEMM -> g0 (HBM, f32) --------------
    pre_fp = (2 * (_nbytes((CH, Bp, Ep), mm_dtype) + _nbytes((CH, Bp, 4 * Hp), jnp.float32))
              + _nbytes((Ep, 4 * Hp), mm_dtype) + _nbytes((1, 4 * Hp), jnp.float32)
              + 2 * _nbytes((1, Ep), jnp.float32))
    g0 = pl.pallas_call(
        functools.partial(_input_gates_kernel, E, CH, mm_dtype),
        out_shape=jax.ShapeDtypeStruct((Tc, Bp, 4 * Hp), jnp.float32),
        grid=(n_chunks,),
        in_specs=[
            pl.BlockSpec((CH, Bp, Ep), lambda i: (i, 0, 0)),
            pl.BlockSpec((1, Ep), lambda i: (0, 0)),
            pl.BlockSpec((1, Ep), lambda i: (0, 0)),
            pl.BlockSpec((Ep, 4 * Hp), lambda i: (0, 0)),
            pl.BlockSpec((1, 4 * Hp), lambda i: (0, 0)),
        ],
        out_specs=pl.BlockSpec((CH, Bp, 4 * Hp), lambda i: (i, 0, 0)),
        compiler_params=pltpu.CompilerParams(
            dimension_semantics=("parallel",),
            vmem_limit_bytes=_vmem_limit(pre_fp)),
    )(seq_tm, gamma, beta, w_ih0_t, b0)

    # --- kernel 2: streamed serial LSTM recurrence -------------------------------
    rec_inputs = [lengths2d, h0, c0, w_hh0_t]
    rec_specs = [
        pl.BlockSpec((Bb, 1), lambda i: (i, 0)),
        pl.BlockSpec((L, Bb, Hp), lambda i: (0, i, 0)),
        pl.BlockSpec((L, Bb, Hp), lambda i: (0, i, 0)),
        pl.BlockSpec((Hp, 4 * Hp), lambda i: (0, 0)),
    ]
    for (w_ih, w_hh, b_ih, b_hh) in params["lstm"][1:]:
        w_ih_t = jnp.pad(pad_gate_rows(w_ih), ((0, 0), (0, Hp - H))).T.astype(mm_dtype)
        w_hh_t = jnp.pad(pad_gate_rows(w_hh), ((0, 0), (0, Hp - H))).T.astype(mm_dtype)
        rec_inputs += [w_ih_t, w_hh_t, pad_gate_vec(b_ih + b_hh)]
        rec_specs += [pl.BlockSpec((Hp, 4 * Hp), lambda i: (0, 0)),
                      pl.BlockSpec((Hp, 4 * Hp), lambda i: (0, 0)),
                      pl.BlockSpec((1, 4 * Hp), lambda i: (0, 0))]
    rec_inputs.append(g0)
    rec_specs.append(pl.BlockSpec(memory_space=pl.ANY))      # streamed manually

    out_shapes = (
        jax.ShapeDtypeStruct((Tc, Bp, Hp), mm_dtype),        # top-layer hidden
        jax.ShapeDtypeStruct((L, Bp, Hp), jnp.float32),      # h_n
        jax.ShapeDtypeStruct((L, Bp, Hp), jnp.float32),      # c_n
    )
    rec_fp = (_nbytes((Bb, 1), jnp.int32) + 2 * _nbytes((L, Bb, Hp), jnp.float32)
              + _nbytes((Hp, 4 * Hp), mm_dtype)
              + (L - 1) * (2 * _nbytes((Hp, 4 * Hp), mm_dtype)
                           + _nbytes((1, 4 * Hp), jnp.float32))
              + _nbytes((Tc, Bb, Hp), mm_dtype) + 2 * _nbytes((L, Bb, Hp), jnp.float32)
              + _nbytes((2 * CH, Bb, 4 * Hp), jnp.float32))

    kernel = functools.partial(_recurrent_kernel, L, Hp, CH, n_chunks, Bb, mm_dtype)
    hid_tm, h_n, c_n = pl.pallas_call(
        kernel,
        out_shape=out_shapes,
        grid=(n_split,),
        in_specs=rec_specs,
        out_specs=(
            pl.BlockSpec((Tc, Bb, Hp), lambda i: (0, i, 0)),
            pl.BlockSpec((L, Bb, Hp), lambda i: (0, i, 0)),
            pl.BlockSpec((L, Bb, Hp), lambda i: (0, i, 0)),
        ),
        scratch_shapes=[pltpu.VMEM((2 * CH, Bb, 4 * Hp), jnp.float32),
                        pltpu.SemaphoreType.DMA((2,))],
        compiler_params=pltpu.CompilerParams(
            dimension_semantics=("parallel",),
            vmem_limit_bytes=_vmem_limit(rec_fp)),
    )(*rec_inputs)

    # pack_padded_sequence(batch_first=True, enforce_sorted=False) ordering:
    # sort batches by length (descending, stable), emit time-major valid positions.
    order = np.argsort(-lengths_np, kind="stable")
    t_idx, b_idx = [], []
    for t in range(Tt):
        for b in order:
            if lengths_np[b] > t:
                t_idx.append(t)
                b_idx.append(int(b))
    N = len(t_idx)
    hid_packed = hid_tm[np.asarray(t_idx), np.asarray(b_idx)]          # (N, Hp) mm_dtype
    # TODO(synk): the packed-row gather could be fused into the projection via
    # scalar-prefetched row indices; kept as XLA glue for clarity.

    # --- kernel 3: vocab projection of ONLY the valid packed positions ----------
    tm = min(512, _round_up(N, 8))
    Np = _round_up(N, tm)
    tn = 512 if Vp % 512 == 0 else (256 if Vp % 256 == 0 else 128)
    hid_packed = jnp.pad(hid_packed, ((0, Np - N), (0, 0)))
    w_lin_t = jnp.pad(params["lin_w"], ((0, Vp - V), (0, Hp - H))).T.astype(mm_dtype)
    b_lin = jnp.pad(params["lin_b"], (0, Vp - V)).reshape(1, Vp)

    proj_fp = 2 * (_nbytes((tm, Hp), mm_dtype) + _nbytes((Hp, tn), mm_dtype)
                   + _nbytes((1, tn), jnp.float32) + _nbytes((tm, tn), jnp.float32))
    logits_pad = pl.pallas_call(
        _proj_kernel,
        out_shape=jax.ShapeDtypeStruct((Np, Vp), jnp.float32),
        grid=(Np // tm, Vp // tn),
        in_specs=[
            pl.BlockSpec((tm, Hp), lambda i, j: (i, 0)),
            pl.BlockSpec((Hp, tn), lambda i, j: (0, j)),
            pl.BlockSpec((1, tn), lambda i, j: (0, j)),
        ],
        out_specs=pl.BlockSpec((tm, tn), lambda i, j: (i, j)),
        compiler_params=pltpu.CompilerParams(
            dimension_semantics=("parallel", "parallel"),
            vmem_limit_bytes=_vmem_limit(proj_fp)),
    )(hid_packed, w_lin_t, b_lin)

    outputs = logits_pad[:N, :V]
    return outputs, (h_n[:, :B, :H], c_n[:, :B, :H])


def init_params(key, embed_size, hidden_size, vocab_size, num_layers):
    """Deterministic synthetic parameters matching the module's shapes."""
    ks = jax.random.split(key, 3 + 4 * num_layers)
    s = 1.0 / np.sqrt(hidden_size)
    params = {
        "embed": jax.random.normal(ks[0], (vocab_size, embed_size), jnp.float32),
        "ln_gamma": jnp.ones((embed_size,), jnp.float32),
        "ln_beta": jnp.zeros((embed_size,), jnp.float32),
        "lin_w": jax.random.uniform(ks[1], (vocab_size, hidden_size), jnp.float32, -s, s),
        "lin_b": jax.random.uniform(ks[2], (vocab_size,), jnp.float32, -s, s),
        "lstm": [],
    }
    k = 3
    for l in range(num_layers):
        in_dim = embed_size if l == 0 else hidden_size
        w_ih = jax.random.uniform(ks[k], (4 * hidden_size, in_dim), jnp.float32, -s, s)
        w_hh = jax.random.uniform(ks[k + 1], (4 * hidden_size, hidden_size), jnp.float32, -s, s)
        b_ih = jax.random.uniform(ks[k + 2], (4 * hidden_size,), jnp.float32, -s, s)
        b_hh = jax.random.uniform(ks[k + 3], (4 * hidden_size,), jnp.float32, -s, s)
        params["lstm"].append((w_ih, w_hh, b_ih, b_hh))
        k += 4
    return params


def reference_forward(params, features, captions, lengths_np, prev_state):
    """Pure-JAX reference of the same (eval-mode) forward pass."""
    H = prev_state[0].shape[-1]
    emb = params["embed"][captions]
    mu = emb.mean(-1, keepdims=True)
    var = ((emb - mu) ** 2).mean(-1, keepdims=True)
    normed = (emb - mu) / jnp.sqrt(var + 1e-6) * params["ln_gamma"] + params["ln_beta"]
    seq = jnp.concatenate([features[:, None, :], normed], axis=1)      # (B, T+1, E)
    B, Tt, _ = seq.shape
    L = len(params["lstm"])
    lengths = np.asarray(lengths_np)
    h = [prev_state[0][l] for l in range(L)]
    c = [prev_state[1][l] for l in range(L)]
    outs = []
    for t in range(Tt):
        x = seq[:, t, :]
        valid = (t < lengths)[:, None]
        for l in range(L):
            w_ih, w_hh, b_ih, b_hh = params["lstm"][l]
            gates = x @ w_ih.T + h[l] @ w_hh.T + b_ih + b_hh
            i_g = jax.nn.sigmoid(gates[:, 0:H])
            f_g = jax.nn.sigmoid(gates[:, H:2 * H])
            g_g = jnp.tanh(gates[:, 2 * H:3 * H])
            o_g = jax.nn.sigmoid(gates[:, 3 * H:])
            cn = f_g * c[l] + i_g * g_g
            hn = o_g * jnp.tanh(cn)
            h[l] = jnp.where(valid, hn, h[l])
            c[l] = jnp.where(valid, cn, c[l])
            x = h[l]
        outs.append(x)
    hid = jnp.stack(outs, axis=0)                                      # (T+1, B, H)
    logits = hid @ params["lin_w"].T + params["lin_b"]
    order = np.argsort(-lengths, kind="stable")
    rows = [logits[t, b] for t in range(Tt) for b in order if lengths[b] > t]
    return jnp.stack(rows), (jnp.stack(h), jnp.stack(c))


if __name__ == "__main__":
    embed_size, hidden_size, vocab_size, num_layers = 32, 32, 64, 2
    B, T = 2, 8
    key = jax.random.PRNGKey(0)
    kp, kf, kc = jax.random.split(key, 3)
    params = init_params(kp, embed_size, hidden_size, vocab_size, num_layers)

    features = jax.random.normal(kf, (B, embed_size), jnp.float32)
    captions = jax.random.randint(kc, (B, T), 0, vocab_size, dtype=jnp.int32)
    lengths = np.array([9, 5], dtype=np.int32)   # valid steps of the (T+1)-long concat sequence
    prev_state = (jnp.zeros((num_layers, B, hidden_size), jnp.float32),
                  jnp.zeros((num_layers, B, hidden_size), jnp.float32))

    # f32 matmul path: tight check against the f32 reference.
    outputs, (h_n, c_n) = decoder_rnn_forward(params, features, captions, lengths,
                                              prev_state, mm_dtype=jnp.float32)
    jax.block_until_ready((outputs, h_n, c_n))

    ref_out, (ref_h, ref_c) = reference_forward(params, features, captions, lengths, prev_state)
    assert outputs.shape == (int(lengths.sum()), vocab_size)
    np.testing.assert_allclose(np.asarray(outputs), np.asarray(ref_out), rtol=1e-4, atol=1e-4)
    np.testing.assert_allclose(np.asarray(h_n), np.asarray(ref_h), rtol=1e-4, atol=1e-4)
    np.testing.assert_allclose(np.asarray(c_n), np.asarray(ref_c), rtol=1e-4, atol=1e-4)

    # bf16 matmul-operand path (default): f32 accumulate / gate math / state;
    # checked loosely against the f32 reference.
    out_bf, (h_bf, c_bf) = decoder_rnn_forward(params, features, captions, lengths,
                                               prev_state, mm_dtype=jnp.bfloat16)
    jax.block_until_ready((out_bf, h_bf, c_bf))
    np.testing.assert_allclose(np.asarray(out_bf), np.asarray(ref_out), rtol=2e-1, atol=2e-1)
    np.testing.assert_allclose(np.asarray(h_bf), np.asarray(ref_h), rtol=2e-1, atol=2e-1)

    print("KERNEL_OK")
</pallas_src>

<mosaic_0001>
module attributes {stable_mosaic.version = 11 : i64} {
  func.func @_input_gates_kernel(%arg0: i32, %arg1: memref<8x8x128xf32, #tpu.memory_space<vmem>>, %arg2: memref<1x128xf32, #tpu.memory_space<vmem>>, %arg3: memref<1x128xf32, #tpu.memory_space<vmem>>, %arg4: memref<128x512xf32, #tpu.memory_space<vmem>>, %arg5: memref<1x512xf32, #tpu.memory_space<vmem>>, %arg6: memref<8x8x512xf32, #tpu.memory_space<vmem>>) attributes {dimension_semantics = [#tpu.dimension_semantics<parallel>], iteration_bounds = array<i64: 2>, scalar_prefetch = 0 : i64, scratch_operands = 0 : i64, tpu.core_type = #tpu.core_type<tc>, window_params = [{transform_indices = @transform_0, window_bounds = array<i64: 8, 8, 128>}, {pipeline_mode = #tpu.pipeline_mode<synchronous>, transform_indices = @transform_1, window_bounds = array<i64: 1, 128>}, {pipeline_mode = #tpu.pipeline_mode<synchronous>, transform_indices = @transform_2, window_bounds = array<i64: 1, 128>}, {pipeline_mode = #tpu.pipeline_mode<synchronous>, transform_indices = @transform_3, window_bounds = array<i64: 128, 512>}, {pipeline_mode = #tpu.pipeline_mode<synchronous>, transform_indices = @transform_4, window_bounds = array<i64: 1, 512>}, {transform_indices = @transform_5, window_bounds = array<i64: 8, 8, 512>}]} {
    %c0 = arith.constant 0 : index
    %c0_0 = arith.constant 0 : index
    %c0_1 = arith.constant 0 : index
    %0 = vector.load %arg1[%c0, %c0_0, %c0_1] : memref<8x8x128xf32, #tpu.memory_space<vmem>>, vector<8x8x128xf32>
    %1 = tpu.iota {dimensions = array<i32: 2>} : vector<8x8x128xi32>
    %c32_i32 = arith.constant 32 : i32
    %2 = vector.broadcast %c32_i32 : i32 to vector<8x8x128xi32>
    %3 = arith.cmpi slt, %1, %2 : vector<8x8x128xi32>
    %cst = arith.constant dense<0.000000e+00> : vector<8x8xf32>
    %4 = vector.multi_reduction <add>, %0, %cst [2] : vector<8x8x128xf32> to vector<8x8xf32>
    %5 = vector.shape_cast %4 : vector<8x8xf32> to vector<8x8x1xf32>
    %cst_2 = arith.constant 3.125000e-02 : f32
    %6 = vector.broadcast %cst_2 : f32 to vector<8x8x1xf32>
    %7 = arith.mulf %5, %6 : vector<8x8x1xf32>
    %8 = vector.broadcast %7 : vector<8x8x1xf32> to vector<8x8x128xf32>
    %9 = arith.subf %0, %8 : vector<8x8x128xf32>
    %cst_3 = arith.constant 0.000000e+00 : f32
    %10 = vector.broadcast %cst_3 : f32 to vector<8x8x128xf32>
    %11 = arith.select %3, %9, %10 : vector<8x8x128xi1>, vector<8x8x128xf32>
    %12 = arith.mulf %11, %11 : vector<8x8x128xf32>
    %cst_4 = arith.constant dense<0.000000e+00> : vector<8x8xf32>
    %13 = vector.multi_reduction <add>, %12, %cst_4 [2] : vector<8x8x128xf32> to vector<8x8xf32>
    %14 = vector.shape_cast %13 : vector<8x8xf32> to vector<8x8x1xf32>
    %cst_5 = arith.constant 3.125000e-02 : f32
    %15 = vector.broadcast %cst_5 : f32 to vector<8x8x1xf32>
    %16 = arith.mulf %14, %15 : vector<8x8x1xf32>
    %cst_6 = arith.constant 9.99999997E-7 : f32
    %17 = vector.broadcast %cst_6 : f32 to vector<8x8x1xf32>
    %18 = arith.addf %16, %17 : vector<8x8x1xf32>
    %19 = math.rsqrt %18 : vector<8x8x1xf32>
    %20 = vector.broadcast %19 : vector<8x8x1xf32> to vector<8x8x128xf32>
    %21 = arith.mulf %11, %20 : vector<8x8x128xf32>
    %c0_7 = arith.constant 0 : index
    %c0_8 = arith.constant 0 : index
    %22 = vector.load %arg2[%c0_7, %c0_8] : memref<1x128xf32, #tpu.memory_space<vmem>>, vector<1x128xf32>
    %23 = vector.shape_cast %22 : vector<1x128xf32> to vector<1x1x128xf32>
    %24 = vector.broadcast %23 : vector<1x1x128xf32> to vector<8x8x128xf32>
    %25 = arith.mulf %21, %24 : vector<8x8x128xf32>
    %c0_9 = arith.constant 0 : index
    %c0_10 = arith.constant 0 : index
    %26 = vector.load %arg3[%c0_9, %c0_10] : memref<1x128xf32, #tpu.memory_space<vmem>>, vector<1x128xf32>
    %27 = vector.shape_cast %26 : vector<1x128xf32> to vector<1x1x128xf32>
    %28 = vector.broadcast %27 : vector<1x1x128xf32> to vector<8x8x128xf32>
    %29 = arith.addf %25, %28 : vector<8x8x128xf32>
    %30 = tpu.iota {dimensions = array<i32: 0>} : vector<8x1x1xi32>
    %c8_i32 = arith.constant 8 : i32
    %31 = arith.muli %arg0, %c8_i32 : i32
    %32 = vector.broadcast %31 : i32 to vector<8x1x1xi32>
    %33 = arith.addi %30, %32 : vector<8x1x1xi32>
    %c0_i32 = arith.constant 0 : i32
    %34 = vector.broadcast %c0_i32 : i32 to vector<8x1x1xi32>
    %35 = arith.cmpi eq, %33, %34 : vector<8x1x1xi32>
    %36 = vector.shape_cast %35 : vector<8x1x1xi1> to vector<8x1x1xi1>
    %37 = vector.broadcast %36 : vector<8x1x1xi1> to vector<8x8x128xi1>
    %38 = arith.select %37, %0, %29 : vector<8x8x128xi1>, vector<8x8x128xf32>
    %39 = vector.shape_cast %38 : vector<8x8x128xf32> to vector<64x128xf32>
    %c0_11 = arith.constant 0 : index
    %c0_12 = arith.constant 0 : index
    %40 = vector.load %arg4[%c0_11, %c0_12] : memref<128x512xf32, #tpu.memory_space<vmem>>, vector<128x512xf32>
    %cst_13 = arith.constant dense<0.000000e+00> : vector<64x512xf32>
    %41 = tpu.matmul %39, %40, %cst_13 {dimension_numbers = #tpu.dot_dimension_numbers<[1], [0], [0], [1], [0, 0, 1, 1], [], []>} : vector<64x128xf32>, vector<128x512xf32>, vector<64x512xf32> -> vector<64x512xf32>
    %c0_14 = arith.constant 0 : index
    %c0_15 = arith.constant 0 : index
    %42 = vector.load %arg5[%c0_14, %c0_15] : memref<1x512xf32, #tpu.memory_space<vmem>>, vector<1x512xf32>
    %43 = vector.broadcast %42 : vector<1x512xf32> to vector<64x512xf32>
    %44 = arith.addf %41, %43 : vector<64x512xf32>
    %45 = vector.shape_cast %44 : vector<64x512xf32> to vector<8x8x512xf32>
    %c0_16 = arith.constant 0 : index
    %c0_17 = arith.constant 0 : index
    %c0_18 = arith.constant 0 : index
    %46 = vector.load %arg6[%c0_16, %c0_17, %c0_18] : memref<8x8x512xf32, #tpu.memory_space<vmem>>, vector<8x8x512xf32>
    tpu.vector_store %arg6[%c0_16, %c0_17, %c0_18], %45 {strides = array<i32>} : memref<8x8x512xf32, #tpu.memory_space<vmem>>, vector<8x8x512xf32>,
    return
  }
  func.func @transform_0(%arg0: i32) -> (i32, i32, i32) {
    %c0_i32 = arith.constant 0 : i32
    %c0_i32_0 = arith.constant 0 : i32
    %c0_i32_1 = arith.constant 0 : i32
    return %arg0, %c0_i32, %c0_i32_0 : i32, i32, i32
  }
  func.func @transform_1(%arg0: i32) -> (i32, i32) {
    %c0_i32 = arith.constant 0 : i32
    %c0_i32_0 = arith.constant 0 : i32
    %c0_i32_1 = arith.constant 0 : i32
    return %c0_i32, %c0_i32_0 : i32, i32
  }
  func.func @transform_2(%arg0: i32) -> (i32, i32) {
    %c0_i32 = arith.constant 0 : i32
    %c0_i32_0 = arith.constant 0 : i32
    %c0_i32_1 = arith.constant 0 : i32
    return %c0_i32, %c0_i32_0 : i32, i32
  }
  func.func @transform_3(%arg0: i32) -> (i32, i32) {
    %c0_i32 = arith.constant 0 : i32
    %c0_i32_0 = arith.constant 0 : i32
    %c0_i32_1 = arith.constant 0 : i32
    return %c0_i32, %c0_i32_0 : i32, i32
  }
  func.func @transform_4(%arg0: i32) -> (i32, i32) {
    %c0_i32 = arith.constant 0 : i32
    %c0_i32_0 = arith.constant 0 : i32
    %c0_i32_1 = arith.constant 0 : i32
    return %c0_i32, %c0_i32_0 : i32, i32
  }
  func.func @transform_5(%arg0: i32) -> (i32, i32, i32) {
    %c0_i32 = arith.constant 0 : i32
    %c0_i32_0 = arith.constant 0 : i32
    %c0_i32_1 = arith.constant 0 : i32
    return %arg0, %c0_i32, %c0_i32_0 : i32, i32, i32
  }
}

</mosaic_0001>

<bundles_post_ra>
// kernel: tpu_custom_call.1
= control target key start
LH: loop header
LB: loop body
LE: loop exit
PB: predicated region body
PF: predicated region fallthrough
CT: control target
= control target key end

     0   :  { %10 = vsyncpa [#allocation3], 0  ;;  %s1640_s0 = inlined_call_operand.hbm [shape: f32[16,8,128], index: 0, kind: input, shape index: {}]   ;;  %s1641_s1 = inlined_call_operand.vmem [shape: f32[1,128], index: 1, kind: input, shape index: {}]   ;;  %s1642_s2 = inlined_call_operand.vmem [shape: f32[1,128], index: 2, kind: input, shape index: {}]   ;;  %s1643_s3 = inlined_call_operand.hbm [shape: f32[128,512], index: 3, kind: input, shape index: {}]   ;;  %s1644_s4 = inlined_call_operand.vmem [shape: f32[1,512], index: 4, kind: input, shape index: {}]   ;;  %s1645_s5 = inlined_call_operand.hbm [shape: f32[16,8,512], index: 5, kind: output, shape index: {}]  }
   0x1   :  { %12 = vsyncpa [#allocation3 + $0x1], 0 }
   0x2   :  { %13 = vsyncpa [#allocation6], 0 }
   0x3   :  { %14 = vsyncpa [#allocation4], 0 }
   0x4   :  { %16 = vsyncpa [#allocation4 + $0x1], 0  ;;  %s1217_s18 = smov 0   ;;  %s1219_s19 = smov 0  }
   0x5   :  { %s1221_s20 = smov 0   ;;  %s1223_s21 = smov 0  }
   0x6 LB: > { %s1238_s22 = sadd.s32 4294967295, %s1175_s21   ;;  %s880_s23 = sadd.s32 4294967294, %s1175_s21   ;;  %s1175_s21 = sphi %s1223_s21, %s1665_s21   ;;  %s1171_s20 = sphi %s1221_s20, %s1664_s20   ;;  %s1167_s19 = sphi %s1219_s19, %s1663_s19   ;;  %s1163_s18 = sphi %s1217_s18, %s1662_s18  }
   0x7   : > { %p42_p0 = scmp.ne.s32.totalorder %s1167_s19, %s1163_s18  ;;  %p1646_p1 = scmp.eq.s32.totalorder %s1238_s22, 0 }
   0x8   : > { %p156_p3 = scmp.eq.s32.totalorder %s880_s23, 1  ;;  %p881_p5 = scmp.ge.s32.totalorder %s1175_s21, 1 }
   0x9   : > { %p1247_p4 = por %p1646_p1, %p42_p0  ;;  %p163_p7 = scmp.lt.s32.totalorder %s1175_s21, 3 }
   0xa   : > { %p1252_p6 = por %p156_p3, %p42_p0  ;;  %s1177_s27 = smov [#allocation5]  }
   0xb   : > { %s1649_s24 = scalar_select %p1247_p4, 1, 0 }
   0xc   : > { %s1650_s25 = scalar_select %p1252_p6, 1, 0 }
   0xd   : > { %p1257_p8 = pnand %p881_p5, %p163_p7  ;;  %s181_s28 = sshll.u32 %s1177_s27, 4  ;;  %s1261_s28 = int_to_ptr.vmem [resolvable:$true] %s181_s28 }
   0xe   : > { %s1273_s30 = sadd.s32 1, %s1175_s21   ;;  %s29_s6 = sadd.s32 1, %s1171_s20 }
   0xf   : > { %s1651_s26 = scalar_select %p1257_p8, 1, 0 }
  0x10   : > { %p975_p9 = pneg %p1257_p8  ;;  %s26_s7 = ssub.s32 %s1175_s21, %s1273_s30 }
  0x11   : > { %s1047_s10 = scalar_lea.hbm %s1643_s3, 8192 }
  0x12   : > { %p1268_p11 = pnand %p975_p9, %p1646_p1  ;;  %p1048_p12 = scmp.ne.s32.totalorder %s1643_s3, %s1047_s10 }
  0x13   : > { %p1054_p5 = scmp.lt.u32.totalorder %s1047_s10, %s1643_s3 }
  0x14   : > { %p1049_p13 = pneg %p1268_p11 }
  0x16   : > { %p1050_p0 = pnand %p1049_p13, %p1048_p12 }
  0x18   : > { %p1051_p3 = pneg %p1050_p0 }
  0x1a   : > { %p1056_p7 = pnand %p1054_p5, %p1051_p3 }
  0x1c   : > { %1059 = shalt.err (!%p1056_p7)
}
  0x1d   : > { %s1060_s15 = scalar_lea.vmem %s1261_s28, 8192  ;;  %p1068_p2 = scmp.lt.s32.totalorder %s1261_s28, %s1261_s28 }
  0x1e   : > { %p1061_p9 = scmp.ne.s32.totalorder %s1261_s28, %s1060_s15  ;;  %p1069_p6 = scmp.lt.s32.totalorder %s1060_s15, %s1060_s15 }
  0x20   : > { %p1063_p10 = pnand %p1061_p9, %p1049_p13  ;;  %p1070_p4 = por %p1069_p6, %p1068_p2 }
  0x22   : > { %p1064_p1 = pneg %p1063_p10 }
  0x24   : > { %p1071_p8 = pnand %p1070_p4, %p1064_p1 }
  0x26   : > { %1074 = shalt.err (!%p1071_p8)
}
  0x27   : > { %s1178_s16 = smov 512   ;;  %s1179_s17 = smov 32  }
  0x28   : > { %978 = dma.hbm_to_vmem [thread:$0]  (!%p1268_p11), %s1643_s3, 8192, %s1261_s28, [#allocation6], %s1178_s16, %s1178_s16, %s1179_s17  }
  0x29   : > { %p27_p2 = scmp.eq.s32.totalorder %s26_s7, 0  ;;  %p36_p1 = scmp.ne.s32.totalorder %s1171_s20, %s1167_s19 }
  0x2a   : > { %p37_p4 = scmp.eq.s32.totalorder %s1175_s21, 0  ;;  %p988_p6 = scmp.lt.s32.totalorder %s1175_s21, 2 }
  0x2b   : > { %s1304_s8 = scalar_select %p27_p2, %s1171_s20, %s29_s6  }
  0x2c   : > { %p38_p8 = por %p37_p4, %p36_p1  ;;  %p1653_p10 = scmp.eq.s32.totalorder %s1238_s22, 1 }
  0x2d   : > { %s198_s10 = sand.u32 1, %s1171_s20   ;;  %s900_s11 = sshll.u32 %s1175_s21, 10 }
  0x2e   : > { %p1308_p12 = por %p1653_p10, %p36_p1  ;;  %s884_s12 = sshll.u32 %s198_s10, 6 }
  0x2f   : > { %s1317_s14 = scalar_lea.hbm %s1640_s0, %s900_s11  ;;  %s202_s28 = scalar_lea.vmem [#allocation2], %s884_s12 }
  0x30   : > { %s209_s6 = sshll.u32 %s202_s28, 4  ;;  %p1319_p11 = pnand %p988_p6, %p38_p8  ;;  %s1323_s6 = int_to_ptr.vmem [resolvable:$true] %s209_s6 }
  0x31   : > { %s1325_s15 = scalar_lea.sflag [#allocation3], %s198_s10  ;;  %s1075_s16 = scalar_lea.hbm %s1317_s14, 1024 }
  0x32   : > { %p1076_p13 = scmp.ne.s32.totalorder %s1317_s14, %s1075_s16  ;;  %p1077_p0 = pneg %p1319_p11 }
  0x33   : > { %s1080_s27 = scalar_lea.hbm %s1640_s0, 2048  ;;  %p1081_p7 = scmp.lt.u32.totalorder %s1317_s14, %s1640_s0 }
  0x34   : > { %p1078_p3 = pnand %p1077_p0, %p1076_p13  ;;  %p1082_p9 = scmp.lt.u32.totalorder %s1080_s27, %s1075_s16 }
  0x35   : > { %p1084_p1 = scmp.lt.u32.totalorder %s1075_s16, %s1317_s14 }
  0x36   : > { %p1079_p5 = pneg %p1078_p3  ;;  %p1083_p2 = por %p1082_p9, %p1081_p7 }
  0x38   : > { %p1085_p4 = por %p1084_p1, %p1083_p2 }
  0x3a   : > { %p1086_p6 = pnand %p1085_p4, %p1079_p5 }
  0x3c   : > { %1089 = shalt.err (!%p1086_p6)
}
  0x3d   : > { %s1090_s10 = scalar_lea.vmem %s1323_s6, 1024  ;;  %s1180_s29 = smov [#allocation2]  }
  0x3e   : > { %p1091_p8 = scmp.ne.s32.totalorder %s1323_s6, %s1090_s10  ;;  %s1095_s13 = sshll.u32 %s1180_s29, 4  ;;  %s1096_s13 = int_to_ptr.vmem [resolvable:$false] %s1095_s13 }
  0x3f   : > { %s1097_s28 = scalar_lea.vmem %s1096_s13, 2048  ;;  %p1098_p3 = scmp.lt.s32.totalorder %s1323_s6, %s1096_s13 }
  0x40   : > { %p1093_p10 = pnand %p1091_p8, %p1077_p0  ;;  %p1099_p7 = scmp.lt.s32.totalorder %s1097_s28, %s1090_s10 }
  0x42   : > { %p1094_p13 = pneg %p1093_p10  ;;  %p1100_p9 = por %p1099_p7, %p1098_p3 }
  0x44   : > { %p1101_p2 = pnand %p1100_p9, %p1094_p13 }
  0x46   : > { %1104 = shalt.err (!%p1101_p2)
}
  0x47   : > { %s1181_s16 = smov 128   ;;  %s1182_s17 = smov 8  }
  0x48   : > { %982 = dma.hbm_to_vmem [thread:$0]  (!%p1319_p11), %s1317_s14, 1024, %s1323_s6, %s1325_s15, %s1181_s16, %s1181_s16, %s1182_s17  }
  0x49   : > { %p1656_p0 = scmp.ne.s32.totalorder %s1651_s26, 0 }
  0x4a   : > { %s1356_s23 = sand.u32 (!%p1656_p0), 1, %s1167_s19   ;;  %p1657_p5 = scmp.ne.s32.totalorder (!%p1656_p0), %s1649_s24, 0 }
  0x4b   : > { %221 = sbr.rel (%p1656_p0) target bundleno = 658 (0x292), region = 40  ;;  %s888_s27 = sshll.u32 (!%p1656_p0), %s1356_s23, 6 }
  0x4c   : > { %s224_s11 = scalar_lea.sflag (!%p1656_p0), [#allocation3], %s1356_s23  ;;  %s227_s12 = scalar_lea.vmem (!%p1656_p0), [#allocation2], %s888_s27 }
  0x52   : > { %1150 = dma.done.wait (%p1657_p5), %s224_s11, 1024  }
  0x53   : > { %1152 = vsyncadd (%p1657_p5), %s224_s11, 4294966272  ;;  %p1658_p1 = scmp.eq.s32.totalorder %s1238_s22, 0 }
  0x55   : > { %1154 = dma.done.wait (%p1658_p1), [#allocation6], 8192   ;;  %p1659_p11 = pmov %p1658_p1 }
  0x56   : > { %v1368_v0 = vld [vmem:[%s227_s12] sm:$0xff]  ;;  %v1370_v1 = vld [vmem:[%s227_s12 + $0x10] sm:$0xff]  ;;  %v1374_v2 = vld [vmem:[%s227_s12 + $0x8] sm:$0xff]  ;;  %v268_v44 = vlaneseq  ;;  %s893_s24 = sshll.u32 %s1238_s22, 3  ;;  %s890_s29 = sshll.u32 %s1356_s23, 8 }
  0x57   : > { %1156 = vsyncadd (%p1659_p11), [#allocation6], 4294959104  ;;  %271 = vadd.xlane.f32.xlu0 %v1368_v0  ;;  %275 = vadd.xlane.f32.xlu1 %v1370_v1  ;;  %v1376_v3 = vld [vmem:[%s227_s12 + $0x18] sm:$0xff]  ;;  %v1380_v4 = vld [vmem:[%s227_s12 + $0x20] sm:$0xff]  ;;  %s1527_s13 = scalar_lea.vmem [#allocation7], %s890_s29  ;;  %s902_s28 = sshll.u32 %s1238_s22, 12 }
  0x58   : > { %v1382_v5 = vld [vmem:[%s227_s12 + $0x28] sm:$0xff]  ;;  %v1386_v6 = vld [vmem:[%s227_s12 + $0x30] sm:$0xff]  ;;  %v1388_v7 = vld [vmem:[%s227_s12 + $0x38] sm:$0xff]  ;;  %v269_v45 = vand.u32 127, %v268_v44  ;;  %s797_s16 = sshll.u32 %s1527_s13, 4  ;;  %s1588_s27 = scalar_lea.hbm %s1645_s5, %s902_s28  ;;  %s1590_s16 = int_to_ptr.vmem [resolvable:$true] %s797_s16 }
  0x59   : > { %v439_v8 = vld [vmem:[#allocation5 + $0x8] sm:$0xff]  ;;  %v441_v10 = vld [vmem:[#allocation5 + $0x18] sm:$0xff]  ;;  %v438_v13 = vld [vmem:[#allocation5] sm:$0xff]  ;;  %s783_s11 = scalar_lea.sflag [#allocation4], %s1356_s23  ;;  %s1105_s12 = scalar_lea.vmem %s1590_s16, 4096 }
  0x5a   : > { %v443_v9 = vld [vmem:[#allocation5 + $0x28] sm:$0xff]  ;;  %v445_v12 = vld [vmem:[#allocation5 + $0x38] sm:$0xff]  ;;  %v442_v14 = vld [vmem:[#allocation5 + $0x20] sm:$0xff]  ;;  %vm270_vm0 = vcmp.lt.s32.totalorder %v269_v45, 32  ;;  %p1106_p4 = scmp.ne.s32.totalorder %s1590_s16, %s1105_s12 }
  0x5b   : > { %273 = vadd.xlane.f32.xlu0 %v1374_v2  ;;  %277 = vadd.xlane.f32.xlu1 %v1376_v3  ;;  %v903_v11 = vpack.c.bf16 %v443_v9, %v439_v8  ;;  %v935_v15 = vpack.c.bf16 %v445_v12, %v441_v10  ;;  %v905_v16 = vpack.c.bf16 %v442_v14, %v438_v13  ;;  %v440_v17 = vld [vmem:[#allocation5 + $0x10] sm:$0xff]  ;;  %v447_v19 = vld [vmem:[#allocation5 + $0x48] sm:$0xff]  ;;  %v449_v22 = vld [vmem:[#allocation5 + $0x58] sm:$0xff] }
  0x5c   : > { %v444_v18 = vld [vmem:[#allocation5 + $0x30] sm:$0xff]  ;;  %v451_v21 = vld [vmem:[#allocation5 + $0x68] sm:$0xff]  ;;  %v453_v23 = vld [vmem:[#allocation5 + $0x78] sm:$0xff]  ;;  %p1107_p6 = pnand %p1106_p4, %p1308_p12 }
  0x5d   : > { %904 = vmatprep.subr.bf16.mxu0 %v903_v11  ;;  %v937_v20 = vpack.c.bf16 %v444_v18, %v440_v17  ;;  %936 = vmatprep.subr.bf16.mxu1 %v935_v15  ;;  %v907_v24 = vpack.c.bf16 %v451_v21, %v447_v19  ;;  %v939_v25 = vpack.c.bf16 %v453_v23, %v449_v22  ;;  %v446_v26 = vld [vmem:[#allocation5 + $0x40] sm:$0xff]  ;;  %v448_v28 = vld [vmem:[#allocation5 + $0x50] sm:$0xff]  ;;  %v455_v31 = vld [vmem:[#allocation5 + $0x88] sm:$0xff] }
  0x5e   : > { %906 = vmatpush1.bf16.msra.mxu0 %v905_v16  ;;  %v450_v27 = vld [vmem:[#allocation5 + $0x60] sm:$0xff]  ;;  %v452_v30 = vld [vmem:[#allocation5 + $0x70] sm:$0xff]  ;;  %v459_v32 = vld [vmem:[#allocation5 + $0xa8] sm:$0xff]  ;;  %p1108_p8 = pneg %p1107_p6 }
  0x5f   : > { %279 = vadd.xlane.f32.xlu0 %v1380_v4  ;;  %281 = vadd.xlane.f32.xlu1 %v1382_v5  ;;  %v909_v29 = vpack.c.bf16 %v450_v27, %v446_v26  ;;  %v941_v33 = vpack.c.bf16 %v452_v30, %v448_v28  ;;  %v911_v34 = vpack.c.bf16 %v459_v32, %v455_v31  ;;  %v457_v35 = vld [vmem:[#allocation5 + $0x98] sm:$0xff]  ;;  %v454_v37 = vld [vmem:[#allocation5 + $0x80] sm:$0xff]  ;;  %v456_v40 = vld [vmem:[#allocation5 + $0x90] sm:$0xff] }
  0x60   : > { %938 = vmatpush1.bf16.msra.mxu1 %v937_v20  ;;  %908 = vmatprep.subr.bf16.mxu0 %v907_v24  ;;  %v461_v36 = vld [vmem:[#allocation5 + $0xb8] sm:$0xff]  ;;  %v458_v39 = vld [vmem:[#allocation5 + $0xa0] sm:$0xff]  ;;  %v460_v41 = vld [vmem:[#allocation5 + $0xb0] sm:$0xff] }
  0x61   : > { %940 = vmatprep.subr.bf16.mxu1 %v939_v25  ;;  %v943_v38 = vpack.c.bf16 %v461_v36, %v457_v35  ;;  %v913_v42 = vpack.c.bf16 %v458_v39, %v454_v37  ;;  %v945_v43 = vpack.c.bf16 %v460_v41, %v456_v40  ;;  %v463_v30 = vld [vmem:[#allocation5 + $0xc8] sm:$0xff]  ;;  %v465_v32 = vld [vmem:[#allocation5 + $0xd8] sm:$0xff]  ;;  %v462_v35 = vld [vmem:[#allocation5 + $0xc0] sm:$0xff] }
  0x62   : > { %910 = vmatpush1.bf16.msra.mxu0 %v909_v29  ;;  %v467_v31 = vld [vmem:[#allocation5 + $0xe8] sm:$0xff]  ;;  %v466_v36 = vld [vmem:[#allocation5 + $0xe0] sm:$0xff]  ;;  %v464_v39 = vld [vmem:[#allocation5 + $0xd0] sm:$0xff] }
  0x63   : > { %283 = vadd.xlane.f32.xlu0 %v1386_v6  ;;  %285 = vadd.xlane.f32.xlu1 %v1388_v7  ;;  %v468_v40 = vld [vmem:[#allocation5 + $0xf0] sm:$0xff]  ;;  %v473_v45 = vld [vmem:[#allocation5 + $0x118] sm:$0xff] }
  0x64   : > { %942 = vmatpush1.bf16.msra.mxu1 %v941_v33  ;;  %912 = vmatprep.subr.bf16.mxu0 %v911_v34  ;;  %v915_v33 = vpack.c.bf16 %v467_v31, %v463_v30  ;;  %v469_v34 = vld [vmem:[#allocation5 + $0xf8] sm:$0xff]  ;;  %v949_v41 = vpack.c.bf16 %v468_v40, %v464_v39  ;;  %v495_v31 = vld [vmem:[#allocation5 + $0x1c8] sm:$0xff]  ;;  %v496_v40 = vld [vmem:[#allocation5 + $0x1d0] sm:$0xff] }
  0x65   : > { %944 = vmatprep.subr.bf16.mxu1 %v943_v38  ;;  %v947_v37 = vpack.c.bf16 %v469_v34, %v465_v32  ;;  %v917_v38 = vpack.c.bf16 %v466_v36, %v462_v35  ;;  %v499_v32 = vld [vmem:[#allocation5 + $0x1e8] sm:$0xff]  ;;  %v501_v35 = vld [vmem:[#allocation5 + $0x1f8] sm:$0xff]  ;;  %v494_v36 = vld [vmem:[#allocation5 + $0x1c0] sm:$0xff] }
  0x66   : > { %914 = vmatpush1.bf16.msra.mxu0 %v913_v42  ;;  %v471_v42 = vld [vmem:[#allocation5 + $0x108] sm:$0xff]  ;;  %v931_v34 = vpack.c.bf16 %v499_v32, %v495_v31 }
  0x67   : > { %916 = vmatprep.subr.bf16.mxu0 %v915_v33  ;;  %v497_v33 = vld [vmem:[#allocation5 + $0x1d8] sm:$0xff] }
  0x68   : > { %946 = vmatpush1.bf16.msra.mxu1 %v945_v43  ;;  %v475_v43 = vld [vmem:[#allocation5 + $0x128] sm:$0xff] }
  0x69   : > { %948 = vmatprep.subr.bf16.mxu1 %v947_v37  ;;  %v498_v37 = vld [vmem:[#allocation5 + $0x1e0] sm:$0xff] }
  0x6a   : > { %918 = vmatpush1.bf16.msra.mxu0 %v917_v38  ;;  %v963_v38 = vpack.c.bf16 %v501_v35, %v497_v33  ;;  %v933_v39 = vpack.c.bf16 %v498_v37, %v494_v36 }
  0x6c   : > { %950 = vmatpush1.bf16.msra.mxu1 %v949_v41  ;;  %v500_v41 = vld [vmem:[#allocation5 + $0x1f0] sm:$0xff] }
  0xe4   : > { %v272_v46 = vpop.xlane.xlu0 %271  ;;  %v276_v47 = vpop.xlane.xlu1 %275 }
  0xe5   : > { %v287_v48 = vmul.f32 0.03125, %v272_v46  ;;  %v289_v49 = vmul.f32 0.03125, %v276_v47  ;;  %v919_v46 = vpack.c.bf16 %v475_v43, %v471_v42  ;;  %v477_v47 = vld [vmem:[#allocation5 + $0x138] sm:$0xff]  ;;  %v965_v42 = vpack.c.bf16 %v500_v41, %v496_v40 }
  0xe6   : > { %v1183_v43 = vmov 0.0  }
  0xe7   : > { %v295_v50 = vsub.f32 %v1368_v0, %v287_v48  ;;  %v297_v51 = vsub.f32 %v1370_v1, %v289_v49  ;;  %v470_v48 = vld [vmem:[#allocation5 + $0x100] sm:$0xff]  ;;  %920 = vmatprep.subr.bf16.mxu0 %v919_v46  ;;  %588 = vmatprep.mubr.f32.mxu0 %v1183_v43 }
  0xe8   : > { %v274_v52 = vpop.xlane.xlu0 %273  ;;  %v278_v53 = vpop.xlane.xlu1 %277  ;;  %v474_v49 = vld [vmem:[#allocation5 + $0x120] sm:$0xff]  ;;  %701 = vmatprep.mubr.f32.mxu1 %v1183_v43 }
  0xe9   : > { %v288_v54 = vmul.f32 0.03125, %v274_v52  ;;  %v290_v55 = vmul.f32 0.03125, %v278_v53  ;;  %v1396_v56 = vsel %vm270_vm0, %v295_v50, 0.0  ;;  %v1399_v57 = vsel %vm270_vm0, %v297_v51, 0.0  ;;  %v472_v52 = vld [vmem:[#allocation5 + $0x110] sm:$0xff] }
  0xea   : > { %v311_v58 = vmul.f32 %v1396_v56, %v1396_v56  ;;  %v313_v63 = vmul.f32 %v1399_v57, %v1399_v57  ;;  %v951_v50 = vpack.c.bf16 %v477_v47, %v473_v45  ;;  %v921_v51 = vpack.c.bf16 %v474_v49, %v470_v48  ;;  %v476_v53 = vld [vmem:[#allocation5 + $0x130] sm:$0xff] }
  0xeb   : > { %v296_v59 = vsub.f32 %v1374_v2, %v288_v54  ;;  %v298_v60 = vsub.f32 %v1376_v3, %v290_v55  ;;  %v953_v54 = vpack.c.bf16 %v476_v53, %v472_v52  ;;  %v479_v55 = vld [vmem:[#allocation5 + $0x148] sm:$0xff] }
  0xec   : > { %319 = vadd.xlane.f32.xlu0 %v311_v58  ;;  %v280_v61 = vpop.xlane.xlu0 %279  ;;  %v282_v62 = vpop.xlane.xlu1 %281  ;;  %952 = vmatprep.subr.bf16.mxu1 %v951_v50  ;;  %v483_v58 = vld [vmem:[#allocation5 + $0x168] sm:$0xff] }
  0xed   : > { %v291_v8 = vmul.f32 0.03125, %v280_v61  ;;  %v292_v9 = vmul.f32 0.03125, %v282_v62  ;;  %v1408_v10 = vsel %vm270_vm0, %v296_v59, 0.0  ;;  %v1411_v11 = vsel %vm270_vm0, %v298_v60, 0.0  ;;  %922 = vmatpush1.bf16.msra.mxu0 %v921_v51  ;;  %v481_v59 = vld [vmem:[#allocation5 + $0x158] sm:$0xff]  ;;  %954 = vmatpush1.bf16.msra.mxu1 %v953_v54  ;;  %v478_v62 = vld [vmem:[#allocation5 + $0x140] sm:$0xff] }
  0xee   : > { %v312_v12 = vmul.f32 %v1408_v10, %v1408_v10  ;;  %v314_v17 = vmul.f32 %v1411_v11, %v1411_v11  ;;  %v923_v60 = vpack.c.bf16 %v483_v58, %v479_v55  ;;  %v485_v61 = vld [vmem:[#allocation5 + $0x178] sm:$0xff] }
  0xef   : > { %v299_v13 = vsub.f32 %v1380_v4, %v291_v8  ;;  %v300_v14 = vsub.f32 %v1382_v5, %v292_v9  ;;  %v955_v8 = vpack.c.bf16 %v485_v61, %v481_v59 }
  0xf0   : > { %323 = vadd.xlane.f32.xlu0 %v313_v63  ;;  %321 = vadd.xlane.f32.xlu1 %v312_v12  ;;  %v284_v15 = vpop.xlane.xlu0 %283  ;;  %v286_v16 = vpop.xlane.xlu1 %285  ;;  %v482_v63 = vld [vmem:[#allocation5 + $0x160] sm:$0xff]  ;;  %v480_v12 = vld [vmem:[#allocation5 + $0x150] sm:$0xff] }
  0xf1   : > { %v293_v18 = vmul.f32 0.03125, %v284_v15  ;;  %v294_v19 = vmul.f32 0.03125, %v286_v16  ;;  %v1420_v20 = vsel %vm270_vm0, %v299_v13, 0.0  ;;  %v1423_v21 = vsel %vm270_vm0, %v300_v14, 0.0  ;;  %v484_v13 = vld [vmem:[#allocation5 + $0x170] sm:$0xff]  ;;  %924 = vmatprep.subr.bf16.mxu0 %v923_v60  ;;  %956 = vmatprep.subr.bf16.mxu1 %v955_v8  ;;  %v487_v15 = vld [vmem:[#allocation5 + $0x188] sm:$0xff] }
  0xf2   : > { %v315_v22 = vmul.f32 %v1420_v20, %v1420_v20  ;;  %v316_v25 = vmul.f32 %v1423_v21, %v1423_v21  ;;  %v925_v9 = vpack.c.bf16 %v482_v63, %v478_v62  ;;  %v957_v14 = vpack.c.bf16 %v484_v13, %v480_v12  ;;  %v491_v16 = vld [vmem:[#allocation5 + $0x1a8] sm:$0xff] }
  0xf3   : > { %v301_v23 = vsub.f32 %v1386_v6, %v293_v18  ;;  %v302_v24 = vsub.f32 %v1388_v7, %v294_v19  ;;  %v927_v18 = vpack.c.bf16 %v491_v16, %v487_v15  ;;  %v493_v19 = vld [vmem:[#allocation5 + $0x1b8] sm:$0xff] }
  0xf4   : > { %325 = vadd.xlane.f32.xlu1 %v314_v17  ;;  %327 = vadd.xlane.f32.xlu0 %v315_v22  ;;  %v489_v17 = vld [vmem:[#allocation5 + $0x198] sm:$0xff]  ;;  %v486_v22 = vld [vmem:[#allocation5 + $0x180] sm:$0xff] }
  0xf5   : > { %v1432_v26 = vsel %vm270_vm0, %v301_v23, 0.0  ;;  %v1435_v27 = vsel %vm270_vm0, %v302_v24, 0.0  ;;  %926 = vmatpush1.bf16.msra.mxu0 %v925_v9  ;;  %958 = vmatpush1.bf16.msra.mxu1 %v957_v14  ;;  %v490_v23 = vld [vmem:[#allocation5 + $0x1a0] sm:$0xff]  ;;  %v959_v24 = vpack.c.bf16 %v493_v19, %v489_v17  ;;  %v1450_v17 = vstv %s893_s24  ;;  %s1184_s24 = smov [#allocation7]  }
  0xf6   : > { %v317_v28 = vmul.f32 %v1432_v26, %v1432_v26  ;;  %v318_v29 = vmul.f32 %v1435_v27, %v1435_v27  ;;  %928 = vmatprep.subr.bf16.mxu0 %v927_v18  ;;  %v1447_v14 = vld [vmem:[%s1641_s1] ss:$0 sm:$0xff]  ;;  %vm406_vm1 = vcmp.eq.s32.totalorder %v1450_v17, 0  ;;  %v400_v36 = vadd.s32 2, %v1450_v17  ;;  %s1109_s26 = sshll.u32 %s1184_s24, 4  ;;  %s1110_s26 = int_to_ptr.vmem [resolvable:$false] %s1109_s26 }
  0xf7   : > { %960 = vmatprep.subr.bf16.mxu1 %v959_v24  ;;  %s1111_s14 = scalar_lea.vmem %s1110_s26, 8192  ;;  %p1112_p10 = scmp.lt.s32.totalorder %s1590_s16, %s1110_s26 }
  0xf8   : > { %329 = vadd.xlane.f32.xlu1 %v316_v25  ;;  %331 = vadd.xlane.f32.xlu0 %v317_v28  ;;  %v929_v25 = vpack.c.bf16 %v490_v23, %v486_v22  ;;  %v488_v28 = vld [vmem:[#allocation5 + $0x190] sm:$0xff]  ;;  %v1455_v22 = vld [vmem:[%s1642_s2] ss:$0 sm:$0xff]  ;;  %vm408_vm3 = vcmp.eq.s32.totalorder %v400_v36, 0  ;;  %p1113_p13 = scmp.lt.s32.totalorder %s1111_s14, %s1105_s12 }
  0xfa   : > { %930 = vmatpush1.bf16.msra.mxu0 %v929_v25  ;;  %v399_v25 = vadd.s32 1, %v1450_v17  ;;  %p1114_p3 = por %p1113_p13, %p1112_p10 }
  0xfb   : > { %932 = vmatprep.subr.bf16.mxu0 %v931_v34 }
  0xfc   : > { %333 = vadd.xlane.f32.xlu1 %v318_v29  ;;  %v492_v29 = vld [vmem:[#allocation5 + $0x1b0] sm:$0xff]  ;;  %vm407_vm2 = vcmp.eq.s32.totalorder %v399_v25, 0  ;;  %p1115_p7 = pnand %p1114_p3, %p1108_p8 }
  0xfd   : > { %v961_v30 = vpack.c.bf16 %v492_v29, %v488_v28 }
  0xfe   : > { %934 = vmatpush1.bf16.msra.mxu0 %v933_v39 }
  0xff   : > { %962 = vmatpush1.bf16.msra.mxu1 %v961_v30 }
 0x100   : > { %964 = vmatprep.subr.bf16.mxu1 %v963_v38 }
 0x103   : > { %966 = vmatpush1.bf16.msra.mxu1 %v965_v42  ;;  %v401_v42 = vadd.s32 3, %v1450_v17 }
 0x105   : > { %vm409_vm4 = vcmp.eq.s32.totalorder %v401_v42, 0 }
 0x179   : > { %v320_v45 = vpop.xlane.xlu0 %319 }
 0x17a   : > { %v335_v46 = vmul.f32 0.03125, %v320_v45 }
 0x17c   : > { %v343_v47 = vadd.f32 1e-06, %v335_v46 }
 0x17d   : > { %v322_v48 = vpop.xlane.xlu1 %321  ;;  %v324_v49 = vpop.xlane.xlu0 %323 }
 0x17e   : > { %1031 = vrsqrt.f32 %v343_v47  ;;  %v336_v50 = vmul.f32 0.03125, %v322_v48  ;;  %v337_v51 = vmul.f32 0.03125, %v324_v49 }
 0x180   : > { %v344_v52 = vadd.f32 1e-06, %v336_v50  ;;  %v345_v53 = vadd.f32 1e-06, %v337_v51 }
 0x181   : > { %v326_v54 = vpop.xlane.xlu1 %325  ;;  %v328_v55 = vpop.xlane.xlu0 %327 }
 0x182   : > { %1033 = vrsqrt.f32 %v344_v52  ;;  %v338_v58 = vmul.f32 0.03125, %v326_v54  ;;  %v339_v59 = vmul.f32 0.03125, %v328_v55 }
 0x183   : > { %1035 = vrsqrt.f32 %v345_v53 }
 0x184   : > { %v346_v60 = vadd.f32 1e-06, %v338_v58  ;;  %v347_v61 = vadd.f32 1e-06, %v339_v59 }
 0x185   : > { %v330_v62 = vpop.xlane.xlu1 %329  ;;  %v332_v63 = vpop.xlane.xlu0 %331 }
 0x186   : > { %1037 = vrsqrt.f32 %v346_v60  ;;  %v340_v8 = vmul.f32 0.03125, %v330_v62  ;;  %v341_v9 = vmul.f32 0.03125, %v332_v63 }
 0x187   : > { %1039 = vrsqrt.f32 %v347_v61  ;;  %v505_v61 = vshrl.u32 %v268_v44, 7 }
 0x188   : > { %v1032_v12 = vpop.eup %1031  ;;  %v348_v13 = vadd.f32 1e-06, %v340_v8  ;;  %v349_v18 = vadd.f32 1e-06, %v341_v9 }
 0x189   : > { %v334_v15 = vpop.xlane.xlu1 %333  ;;  %v359_v16 = vmul.f32 %v1032_v12, %v1396_v56  ;;  %v506_v62 = vsub.s32 0, %v505_v61  ;;  %v514_v63 = vsub.s32 2, %v505_v61  ;;  %v510_v8 = vsub.s32 1, %v505_v61 }
 0x18a   : > { %1041 = vrsqrt.f32 %v348_v13  ;;  %v342_v19 = vmul.f32 0.03125, %v334_v15  ;;  %v518_v9 = vsub.s32 3, %v505_v61 }
 0x18b   : > { %v374_v23 = vmul.f32 %v1447_v14, %v359_v16  ;;  %1043 = vrsqrt.f32 %v349_v18 }
 0x18c   : > { %v1034_v24 = vpop.eup %1033  ;;  %v350_v30 = vadd.f32 1e-06, %v342_v19 }
 0x18d   : > { %v1036_v28 = vpop.eup %1035  ;;  %v389_v56 = vadd.f32 %v1455_v22, %v374_v23  ;;  %v360_v29 = vmul.f32 %v1034_v24, %v1408_v10 }
 0x18e   : > { %v361_v31 = vmul.f32 %v1036_v28, %v1399_v57  ;;  %1045 = vrsqrt.f32 %v350_v30 }
 0x18f   : > { %v430_v32 = vsel %vm406_vm1, %v1368_v0, %v389_v56  ;;  %v375_v33 = vmul.f32 %v1447_v14, %v360_v29 }
 0x190   : > { %v1038_v34 = vpop.eup %1037  ;;  %589 = vmatmul.mubr.f32.vlgmr.msra.gmra.mrb[0].mxu0 %v430_v32  ;;  %702 = vmatmul.mubr.f32.vlgmr.msra.gmra.mrb[0].mxu1 %v430_v32  ;;  %v376_v35 = vmul.f32 %v1447_v14, %v361_v31 }
 0x191   : > { %v1040_v37 = vpop.eup %1039  ;;  %594 = vmatprep.mubr.f32.mxu0 %v1183_v43  ;;  %707 = vmatprep.mubr.f32.mxu1 %v1183_v43  ;;  %v390_v10 = vadd.f32 %v1455_v22, %v375_v33  ;;  %v362_v57 = vmul.f32 %v1038_v34, %v1411_v11 }
 0x192   : > { %v391_v38 = vadd.f32 %v1455_v22, %v376_v35  ;;  %v363_v40 = vmul.f32 %v1040_v37, %v1420_v20  ;;  %v402_v20 = vadd.s32 4, %v1450_v17 }
 0x193   : > { %v431_v0 = vsel %vm407_vm2, %v1374_v2, %v390_v10  ;;  %v377_v39 = vmul.f32 %v1447_v14, %v362_v57 }
 0x194   : > { %v1042_v41 = vpop.eup %1041  ;;  %595 = vmatmul.mubr.f32.gmra.mrb[2].mxu0 %v431_v0  ;;  %708 = vmatmul.mubr.f32.gmra.mrb[2].mxu1 %v431_v0  ;;  %v432_v11 = vsel %vm408_vm3, %v1370_v1, %v391_v38  ;;  %v378_v45 = vmul.f32 %v1447_v14, %v363_v40  ;;  %vm410_vm5 = vcmp.eq.s32.totalorder %v402_v20, 0 }
 0x195   : > { %600 = vmatprep.mubr.f32.mxu0 %v1183_v43  ;;  %713 = vmatprep.mubr.f32.mxu1 %v1183_v43  ;;  %v392_v2 = vadd.f32 %v1455_v22, %v377_v39  ;;  %v364_v46 = vmul.f32 %v1042_v41, %v1423_v21  ;;  %v1044_v47 = vpop.eup %1043  ;;  %v403_v21 = vadd.s32 5, %v1450_v17 }
 0x196   : > { %v393_v1 = vadd.f32 %v1455_v22, %v378_v45  ;;  %v365_v50 = vmul.f32 %v1044_v47, %v1432_v26  ;;  %v404_v26 = vadd.s32 6, %v1450_v17 }
 0x197   : > { %v433_v48 = vsel %vm409_vm4, %v1376_v3, %v392_v2  ;;  %v379_v49 = vmul.f32 %v1447_v14, %v364_v46  ;;  %vm411_vm6 = vcmp.eq.s32.totalorder %v403_v21, 0 }
 0x198   : > { %601 = vmatmul.mubr.f32.gmra.mrb[4].mxu0 %v432_v11  ;;  %714 = vmatmul.mubr.f32.gmra.mrb[4].mxu1 %v432_v11  ;;  %v1046_v51 = vpop.eup %1045  ;;  %v434_v52 = vsel %vm410_vm5, %v1380_v4, %v393_v1  ;;  %v380_v53 = vmul.f32 %v1447_v14, %v365_v50  ;;  %vm412_vm7 = vcmp.eq.s32.totalorder %v404_v26, 0 }
 0x199   : > { %606 = vmatprep.mubr.f32.mxu0 %v1183_v43  ;;  %719 = vmatprep.mubr.f32.mxu1 %v1183_v43  ;;  %v394_v3 = vadd.f32 %v1455_v22, %v379_v49  ;;  %v366_v54 = vmul.f32 %v1046_v51, %v1435_v27  ;;  %v405_v27 = vadd.s32 7, %v1450_v17 }
 0x19a   : > { %v395_v58 = vadd.f32 %v1455_v22, %v380_v53 }
 0x19b   : > { %v435_v55 = vsel %vm411_vm6, %v1382_v5, %v394_v3  ;;  %v381_v4 = vmul.f32 %v1447_v14, %v366_v54  ;;  %vm413_vm8 = vcmp.eq.s32.totalorder %v405_v27, 0 }
 0x19c   : > { %607 = vmatmul.mubr.f32.gmra.mrb[6].mxu0 %v433_v48  ;;  %720 = vmatmul.mubr.f32.gmra.mrb[6].mxu1 %v433_v48  ;;  %v436_v59 = vsel %vm412_vm7, %v1386_v6, %v395_v58  ;;  %v502_v6 = vld [vmem:[%s1644_s4] sm:$0xf] }
 0x19d   : > { %612 = vmatprep.mubr.f32.mxu0 %v1183_v43  ;;  %725 = vmatprep.mubr.f32.mxu1 %v1183_v43  ;;  %v396_v60 = vadd.f32 %v1455_v22, %v381_v4  ;;  %v1515_v12 = vrot.slane %v502_v6, %v506_v62  ;;  %v1517_v13 = vrot.slane %v502_v6, %v514_v63 }
 0x19f   : > { %v437_v5 = vsel %vm413_vm8, %v1388_v7, %v396_v60  ;;  %v1521_v7 = vrot.slane %v502_v6, %v518_v9 }
 0x1a0   : > { %613 = vmatmul.mubr.f32.gmra.mrb[8].mxu0 %v434_v52  ;;  %726 = vmatmul.mubr.f32.gmra.mrb[8].mxu1 %v434_v52 }
 0x1a1   : > { %618 = vmatprep.mubr.f32.mxu0 %v1183_v43  ;;  %731 = vmatprep.mubr.f32.mxu1 %v1183_v43 }
 0x1a4   : > { %619 = vmatmul.mubr.f32.gmra.mrb[10].mxu0 %v435_v55  ;;  %732 = vmatmul.mubr.f32.gmra.mrb[10].mxu1 %v435_v55 }
 0x1a5   : > { %624 = vmatprep.mubr.f32.mxu0 %v1183_v43  ;;  %737 = vmatprep.mubr.f32.mxu1 %v1183_v43 }
 0x1a8   : > { %625 = vmatmul.mubr.f32.gmra.mrb[12].mxu0 %v436_v59  ;;  %738 = vmatmul.mubr.f32.gmra.mrb[12].mxu1 %v436_v59 }
 0x1a9   : > { %630 = vmatprep.mubr.f32.mxu0 %v1183_v43  ;;  %743 = vmatprep.mubr.f32.mxu1 %v1183_v43  ;;  %v1519_v43 = vrot.slane %v502_v6, %v510_v8 }
 0x1ac   : > { %631 = vmatmul.mubr.f32.gmra.mrb[14].mxu0 %v437_v5  ;;  %744 = vmatmul.mubr.f32.gmra.mrb[14].mxu1 %v437_v5 }
 0x263   : > { %v590_v14 = vpop.f32.mrb[0].mxu0  ;;  %v703_v15 = vpop.f32.mrb[0].mxu1 }
 0x264   : > { %v591_v44 = vadd.f32 %v590_v14, %v1515_v12  ;;  %v704_v16 = vadd.f32 %v703_v15, %v1517_v13  ;;  %v592_v17 = vpop.f32.mrb[1].mxu0  ;;  %v705_v18 = vpop.f32.mrb[1].mxu1 }
 0x265   : > { %v593_v19 = vadd.f32 %v592_v17, %v1519_v43  ;;  %v706_v22 = vadd.f32 %v705_v18, %v1521_v7 }
 0x266   : > { %750 = vst [vmem:[%s1527_s13] sm:$0xff] %v591_v44  ;;  %752 = vst [vmem:[%s1527_s13 + $0x10] sm:$0xff] %v704_v16 }
 0x267   : > { %751 = vst [vmem:[%s1527_s13 + $0x8] sm:$0xff] %v593_v19  ;;  %753 = vst [vmem:[%s1527_s13 + $0x18] sm:$0xff] %v706_v22  ;;  %v596_v23 = vpop.f32.mrb[2].mxu0  ;;  %v709_v24 = vpop.f32.mrb[2].mxu1 }
 0x268   : > { %v597_v25 = vadd.f32 %v596_v23, %v1515_v12  ;;  %v710_v28 = vadd.f32 %v709_v24, %v1517_v13  ;;  %v598_v56 = vpop.f32.mrb[3].mxu0  ;;  %v711_v29 = vpop.f32.mrb[3].mxu1 }
 0x269   : > { %v599_v30 = vadd.f32 %v598_v56, %v1519_v43  ;;  %v712_v31 = vadd.f32 %v711_v29, %v1521_v7 }
 0x26a   : > { %754 = vst [vmem:[%s1527_s13 + $0x20] sm:$0xff] %v597_v25  ;;  %756 = vst [vmem:[%s1527_s13 + $0x30] sm:$0xff] %v710_v28 }
 0x26b   : > { %755 = vst [vmem:[%s1527_s13 + $0x28] sm:$0xff] %v599_v30  ;;  %757 = vst [vmem:[%s1527_s13 + $0x38] sm:$0xff] %v712_v31  ;;  %v602_v32 = vpop.f32.mrb[4].mxu0  ;;  %v715_v33 = vpop.f32.mrb[4].mxu1 }
 0x26c   : > { %v603_v34 = vadd.f32 %v602_v32, %v1515_v12  ;;  %v716_v35 = vadd.f32 %v715_v33, %v1517_v13  ;;  %v604_v36 = vpop.f32.mrb[5].mxu0  ;;  %v717_v37 = vpop.f32.mrb[5].mxu1 }
 0x26d   : > { %v605_v10 = vadd.f32 %v604_v36, %v1519_v43  ;;  %v718_v57 = vadd.f32 %v717_v37, %v1521_v7 }
 0x26e   : > { %758 = vst [vmem:[%s1527_s13 + $0x40] sm:$0xff] %v603_v34  ;;  %760 = vst [vmem:[%s1527_s13 + $0x50] sm:$0xff] %v716_v35 }
 0x26f   : > { %759 = vst [vmem:[%s1527_s13 + $0x48] sm:$0xff] %v605_v10  ;;  %761 = vst [vmem:[%s1527_s13 + $0x58] sm:$0xff] %v718_v57  ;;  %v608_v0 = vpop.f32.mrb[6].mxu0  ;;  %v721_v38 = vpop.f32.mrb[6].mxu1 }
 0x270   : > { %v609_v39 = vadd.f32 %v608_v0, %v1515_v12  ;;  %v722_v40 = vadd.f32 %v721_v38, %v1517_v13  ;;  %v610_v41 = vpop.f32.mrb[7].mxu0  ;;  %v723_v42 = vpop.f32.mrb[7].mxu1 }
 0x271   : > { %v611_v11 = vadd.f32 %v610_v41, %v1519_v43  ;;  %v724_v2 = vadd.f32 %v723_v42, %v1521_v7 }
 0x272   : > { %762 = vst [vmem:[%s1527_s13 + $0x60] sm:$0xff] %v609_v39  ;;  %764 = vst [vmem:[%s1527_s13 + $0x70] sm:$0xff] %v722_v40 }
 0x273   : > { %763 = vst [vmem:[%s1527_s13 + $0x68] sm:$0xff] %v611_v11  ;;  %765 = vst [vmem:[%s1527_s13 + $0x78] sm:$0xff] %v724_v2  ;;  %v614_v45 = vpop.f32.mrb[8].mxu0  ;;  %v727_v46 = vpop.f32.mrb[8].mxu1 }
 0x274   : > { %v615_v47 = vadd.f32 %v614_v45, %v1515_v12  ;;  %v728_v20 = vadd.f32 %v727_v46, %v1517_v13  ;;  %v616_v48 = vpop.f32.mrb[9].mxu0  ;;  %v729_v1 = vpop.f32.mrb[9].mxu1 }
 0x275   : > { %v617_v49 = vadd.f32 %v616_v48, %v1519_v43  ;;  %v730_v50 = vadd.f32 %v729_v1, %v1521_v7 }
 0x276   : > { %766 = vst [vmem:[%s1527_s13 + $0x80] sm:$0xff] %v615_v47  ;;  %768 = vst [vmem:[%s1527_s13 + $0x90] sm:$0xff] %v728_v20 }
 0x277   : > { %767 = vst [vmem:[%s1527_s13 + $0x88] sm:$0xff] %v617_v49  ;;  %769 = vst [vmem:[%s1527_s13 + $0x98] sm:$0xff] %v730_v50  ;;  %v620_v51 = vpop.f32.mrb[10].mxu0  ;;  %v733_v21 = vpop.f32.mrb[10].mxu1 }
 0x278   : > { %v621_v52 = vadd.f32 %v620_v51, %v1515_v12  ;;  %v734_v3 = vadd.f32 %v733_v21, %v1517_v13  ;;  %v622_v53 = vpop.f32.mrb[11].mxu0  ;;  %v735_v54 = vpop.f32.mrb[11].mxu1 }
 0x279   : > { %v623_v26 = vadd.f32 %v622_v53, %v1519_v43  ;;  %v736_v55 = vadd.f32 %v735_v54, %v1521_v7 }
 0x27a   : > { %770 = vst [vmem:[%s1527_s13 + $0xa0] sm:$0xff] %v621_v52  ;;  %772 = vst [vmem:[%s1527_s13 + $0xb0] sm:$0xff] %v734_v3 }
 0x27b   : > { %771 = vst [vmem:[%s1527_s13 + $0xa8] sm:$0xff] %v623_v26  ;;  %773 = vst [vmem:[%s1527_s13 + $0xb8] sm:$0xff] %v736_v55  ;;  %v626_v58 = vpop.f32.mrb[12].mxu0  ;;  %v739_v4 = vpop.f32.mrb[12].mxu1 }
 0x27c   : > { %v627_v27 = vadd.f32 %v626_v58, %v1515_v12  ;;  %v740_v59 = vadd.f32 %v739_v4, %v1517_v13  ;;  %v628_v60 = vpop.f32.mrb[13].mxu0  ;;  %v741_v5 = vpop.f32.mrb[13].mxu1 }
 0x27d   : > { %v629_v61 = vadd.f32 %v628_v60, %v1519_v43  ;;  %v742_v62 = vadd.f32 %v741_v5, %v1521_v7 }
 0x27e   : > { %774 = vst [vmem:[%s1527_s13 + $0xc0] sm:$0xff] %v627_v27  ;;  %776 = vst [vmem:[%s1527_s13 + $0xd0] sm:$0xff] %v740_v59 }
 0x27f   : > { %775 = vst [vmem:[%s1527_s13 + $0xc8] sm:$0xff] %v629_v61  ;;  %777 = vst [vmem:[%s1527_s13 + $0xd8] sm:$0xff] %v742_v62  ;;  %v632_v63 = vpop.f32.mrb[14].mxu0  ;;  %v745_v6 = vpop.f32.mrb[14].mxu1 }
 0x280   : > { %v633_v8 = vadd.f32 %v632_v63, %v1515_v12  ;;  %v746_v9 = vadd.f32 %v745_v6, %v1517_v13  ;;  %v634_v14 = vpop.f32.mrb[15].mxu0  ;;  %v747_v15 = vpop.f32.mrb[15].mxu1 }
 0x281   : > { %v635_v44 = vadd.f32 %v634_v14, %v1519_v43  ;;  %v748_v16 = vadd.f32 %v747_v15, %v1521_v7 }
 0x282   : > { %778 = vst [vmem:[%s1527_s13 + $0xe0] sm:$0xff] %v633_v8  ;;  %780 = vst [vmem:[%s1527_s13 + $0xf0] sm:$0xff] %v746_v9 }
 0x283   : > { %779 = vst [vmem:[%s1527_s13 + $0xe8] sm:$0xff] %v635_v44  ;;  %781 = vst [vmem:[%s1527_s13 + $0xf8] sm:$0xff] %v748_v16 }
 0x284   : > { %1118 = shalt.err (!%p1115_p7)
}
 0x285   : > { %s1119_s6 = scalar_lea.hbm %s1588_s27, 4096  ;;  %s1123_s10 = scalar_lea.hbm %s1645_s5, 8192 }
 0x286   : > { %p1120_p9 = scmp.ne.s32.totalorder %s1588_s27, %s1119_s6  ;;  %p1124_p5 = scmp.lt.u32.totalorder %s1588_s27, %s1645_s5 }
 0x287   : > { %p1125_p1 = scmp.lt.u32.totalorder %s1123_s10, %s1119_s6  ;;  %p1127_p4 = scmp.lt.u32.totalorder %s1119_s6, %s1588_s27 }
 0x288   : > { %p1121_p2 = pnand %p1120_p9, %p1308_p12 }
 0x289   : > { %p1126_p11 = por %p1125_p1, %p1124_p5 }
 0x28a   : > { %p1122_p0 = pneg %p1121_p2 }
 0x28b   : > { %p1128_p6 = por %p1127_p4, %p1126_p11 }
 0x28d   : > { %p1129_p8 = pnand %p1128_p6, %p1122_p0 }
 0x28f   : > { %1132 = shalt.err (!%p1129_p8)
}
 0x290   : > { %s1185_s28 = smov 512   ;;  %s1186_s22 = smov 32  }
 0x291   : > { %973 = dma.vmem_to_hbm [thread:$0]  (%p1308_p12), %s1590_s16, 4096, %s1588_s27, %s783_s11, %s1185_s28, %s1185_s28, %s1186_s22  }
 0x292 PF: > { %s812_s17 = sand.u32 1, %s1163_s18   ;;  %p1660_p10 = scmp.ne.s32.totalorder %s1650_s25, 0 }
 0x293   : > { %p1661_p13 = scmp.ge.s32.totalorder %s1175_s21, 2  ;;  %s813_s12 = scalar_lea.sflag [#allocation4], %s812_s17 }
 0x295   : > { %p984_p3 = pnand %p1661_p13, %p1660_p10 }
 0x297   : > { %1158 = dma.done.wait (!%p984_p3), %s813_s12, 4096  }
 0x298   : > { %1160 = vsyncadd (!%p984_p3), %s813_s12, 4294963200  ;;  %p19_p7 = scmp.ge.s32.totalorder %s1273_s30, 4   ;;  %s1662_s18 = smov %s1167_s19 }
 0x299   : > { %s1663_s19 = smov %s1171_s20  ;;  %s1664_s20 = smov %s1304_s8 }
 0x29a   : > { %s1665_s21 = smov %s1273_s30  ;;  %21 = sbr.rel (!%p19_p7) target bundleno = 6 (0x6), region = 89 }
 0x2a1   :  { %818 = vsyncpa [#allocation3], 1 }
 0x2a2   :  { %820 = vsyncpa [#allocation3 + $0x1], 1 }
 0x2a3   :  { %821 = vsyncpa [#allocation6], 1 }
 0x2a4   :  { %822 = vsyncpa [#allocation4], 1 }
 0x2a5   :  { %824 = vsyncpa [#allocation4 + $0x1], 1 }

</bundles_post_ra>
